<compile_context>
chip_gen: v7x
topology: tpu7x:2x2x1
jax: 0.10.0
libtpu: 0.0.40
codegen_flags: <defaults>
</compile_context>

<pallas_src>
import functools

import jax
import jax.numpy as jnp
from jax.experimental import pallas as pl
from jax.experimental.pallas import tpu as pltpu

H1 = 381           # hidden sizes fixed by the PyTorch module
H2 = 70
NEG_BIG = -1e30    # logit value for padded action columns (representable in bf16)


def _round_up(n, m):
    return ((n + m - 1) // m) * m


# ----------------------------------------------------------------------------
# Kernel
# ----------------------------------------------------------------------------
def maddpg_actor_kernel(x_ref, w1_ref, w2_ref, w3_ref, out_ref):
    # x_ref : (TB, OBS_IN) f32; column `obs_size` is all-ones (drives folded biases)
    # w*_ref: bias-augmented bf16 weight slabs, VMEM-resident across all tiles.
    x = x_ref[...].astype(jnp.bfloat16)

    # ---- Layer 1: Linear(obs_size, 381) + ReLU ----
    h1 = jnp.dot(x, w1_ref[...], preferred_element_type=jnp.float32)
    h1 = jnp.maximum(h1, 0.0)                               # f32 elementwise

    # ---- Layer 2: Linear(381, 70) + ReLU ----
    h2 = jnp.dot(h1.astype(jnp.bfloat16), w2_ref[...],
                 preferred_element_type=jnp.float32)
    h2 = jnp.maximum(h2, 0.0)

    # ---- Layer 3: Linear(70, n_actions) ----
    # Padded action columns come out at ~-1e30 (mask folded into w3), so the
    # softmax below ignores them without any extra masking work.
    logits = jnp.dot(h2.astype(jnp.bfloat16), w3_ref[...],
                     preferred_element_type=jnp.float32)    # (TB, ACT_PAD)

    # ---- Softmax over the action axis ----
    m = jnp.max(logits, axis=-1, keepdims=True)
    e = jnp.exp(logits - m)                                 # masked cols underflow to 0
    denom = jnp.sum(e, axis=-1, keepdims=True)
    # Exact reciprocal: rows must sum to 1 within f32 rounding (approx=True was
    # the source of the previous large-batch normalization failure).
    out_ref[...] = e * pl.reciprocal(denom, approx=False)   # lane-dense f32 store


# ----------------------------------------------------------------------------
# Tiling policy
# ----------------------------------------------------------------------------
def _choose_tiling(B):
    """Pick (TB, B_pad, n_tiles).

    Small batches: one 16-row-aligned tile (latency-bound; 16 keeps bf16
    intermediates layout-clean).  Large batches: big tiles (up to 1024 rows) to
    amortize the ~0.35 us per-grid-step overhead, but always >= 2 tiles so the
    'parallel' batch axis can be split across v7x's two TensorCores.
    """
    if B < 256:
        TB = _round_up(max(B, 1), 16)
    else:
        TB = min(1024, _round_up((B + 1) // 2, 128))
    B_pad = _round_up(B, TB)
    return TB, B_pad, B_pad // TB


# ----------------------------------------------------------------------------
# Wrapper
# ----------------------------------------------------------------------------
@functools.partial(jax.jit, static_argnames=("obs_size", "n_actions"))
def maddpg_actor_forward(x, packed, *, obs_size, n_actions):
    """x: (B, obs_size) f32.  packed: dict from pack_params (bf16 slabs)."""
    w1, w2, w3 = packed["w1"], packed["w2"], packed["w3"]
    OBS_IN, H1_PAD = w1.shape
    H2_PAD = w2.shape[1]
    ACT_PAD = w3.shape[1]
    B = x.shape[0]

    TB, B_pad, n_tiles = _choose_tiling(B)

    # Cheap input prep: pad batch, append ones column (drives folded biases),
    # pad features to OBS_IN (=32) f32.  ~same bytes as raw x; the lane-pad to
    # 128 and the bf16 cast happen inside the kernel, not through HBM.
    # NOTE: padded batch rows also get the ones column -> they produce
    # bias-only softmax rows; harmless, they are sliced off below.
    xin = jnp.zeros((B_pad, OBS_IN), jnp.float32)
    xin = xin.at[:B, :obs_size].set(x.astype(jnp.float32))
    xin = xin.at[:, obs_size].set(1.0)

    out = pl.pallas_call(
        maddpg_actor_kernel,
        out_shape=jax.ShapeDtypeStruct((B_pad, ACT_PAD), jnp.float32),
        grid=(n_tiles,),
        in_specs=[
            pl.BlockSpec((TB, OBS_IN), lambda i: (i, 0)),       # batch-tiled x
            pl.BlockSpec((OBS_IN, H1_PAD), lambda i: (0, 0)),   # weights stay
            pl.BlockSpec((H1_PAD, H2_PAD), lambda i: (0, 0)),   #   VMEM-resident
            pl.BlockSpec((H2_PAD, ACT_PAD), lambda i: (0, 0)),  #   across batch
        ],
        out_specs=pl.BlockSpec((TB, ACT_PAD), lambda i: (i, 0)),
        compiler_params=pltpu.CompilerParams(
            dimension_semantics=("parallel",)),                 # megacore on v7x
    )(xin, w1, w2, w3)

    return out[:B, :n_actions]


# ----------------------------------------------------------------------------
# Parameter construction / packing
# ----------------------------------------------------------------------------
def init_params(key, obs_size, n_actions):
    """Deterministic synthetic parameters (PyTorch-Linear-like uniform init)."""
    ks = jax.random.split(key, 6)

    def linear(kw, kb, fan_in, fan_out):
        bound = 1.0 / jnp.sqrt(jnp.float32(fan_in))
        w = jax.random.uniform(kw, (fan_in, fan_out), jnp.float32, -bound, bound)
        b = jax.random.uniform(kb, (1, fan_out), jnp.float32, -bound, bound)
        return w, b

    w1, b1 = linear(ks[0], ks[1], obs_size, H1)
    w2, b2 = linear(ks[2], ks[3], H1, H2)
    w3, b3 = linear(ks[4], ks[5], H2, n_actions)
    return {"w1": w1, "b1": b1, "w2": w2, "b2": b2, "w3": w3, "b3": b3}


def pack_params(params, obs_size, n_actions):
    """One-time packing: pad, fold biases via ones column, fold softmax mask, bf16."""
    OBS_IN = _round_up(obs_size + 1, 16)     # +1 ones column; 16-row aligned -> 32
    H1_PAD = _round_up(H1 + 1, 128)          # 384 (+1 propagated ones column)
    H2_PAD = _round_up(H2 + 1, 128)          # 128
    ACT_PAD = _round_up(n_actions, 128)      # 128

    w1a = jnp.zeros((OBS_IN, H1_PAD), jnp.float32)
    w1a = w1a.at[:obs_size, :H1].set(params["w1"])
    w1a = w1a.at[obs_size, :H1].set(params["b1"].reshape(-1))
    w1a = w1a.at[obs_size, H1].set(1.0)      # propagate ones column into h1

    w2a = jnp.zeros((H1_PAD, H2_PAD), jnp.float32)
    w2a = w2a.at[:H1, :H2].set(params["w2"])
    w2a = w2a.at[H1, :H2].set(params["b2"].reshape(-1))
    w2a = w2a.at[H1, H2].set(1.0)            # propagate ones column into h2

    w3a = jnp.zeros((H2_PAD, ACT_PAD), jnp.float32)
    w3a = w3a.at[:H2, :n_actions].set(params["w3"])
    w3a = w3a.at[H2, :n_actions].set(params["b3"].reshape(-1))
    # Fold the padded-action softmax mask into w3: h2's ones column drives the
    # padded logit columns to NEG_BIG, whose exp underflows to exactly 0.
    w3a = w3a.at[H2, n_actions:].set(NEG_BIG)

    return {"w1": w1a.astype(jnp.bfloat16),
            "w2": w2a.astype(jnp.bfloat16),
            "w3": w3a.astype(jnp.bfloat16)}


# ----------------------------------------------------------------------------
# References
# ----------------------------------------------------------------------------
def reference_f32(x, p):
    """Exact f32 reference of the PyTorch module."""
    h1 = jnp.maximum(x @ p["w1"] + p["b1"], 0.0)
    h2 = jnp.maximum(h1 @ p["w2"] + p["b2"], 0.0)
    logits = h2 @ p["w3"] + p["b3"]
    return jax.nn.softmax(logits, axis=1)


def reference_bf16(x, packed, obs_size, n_actions):
    """Reference mirroring the kernel's bf16/padded math (exact softmax)."""
    B = x.shape[0]
    OBS_IN = packed["w1"].shape[0]
    xin = jnp.zeros((B, OBS_IN), jnp.float32)
    xin = xin.at[:, :obs_size].set(x).at[:, obs_size].set(1.0)
    xin = xin.astype(jnp.bfloat16)
    h1 = jnp.maximum(jnp.dot(xin, packed["w1"],
                             preferred_element_type=jnp.float32), 0.0)
    h2 = jnp.maximum(jnp.dot(h1.astype(jnp.bfloat16), packed["w2"],
                             preferred_element_type=jnp.float32), 0.0)
    logits = jnp.dot(h2.astype(jnp.bfloat16), packed["w3"],
                     preferred_element_type=jnp.float32)
    return jax.nn.softmax(logits[:, :n_actions], axis=1)


# ----------------------------------------------------------------------------
if __name__ == "__main__":
    key = jax.random.PRNGKey(0)
    k_x, k_p, k_xl = jax.random.split(key, 3)

    obs_size = 24
    n_actions = 5

    params = init_params(k_p, obs_size, n_actions)
    packed = pack_params(params, obs_size, n_actions)

    # --- small-batch call (single grid tile) ---
    batch = 2
    x = jax.random.normal(k_x, (batch, obs_size), jnp.float32)
    out = maddpg_actor_forward(x, packed, obs_size=obs_size, n_actions=n_actions)
    out = jax.block_until_ready(out)

    ref_b = reference_bf16(x, packed, obs_size, n_actions)
    ref_f = reference_f32(x, params)
    assert out.shape == (batch, n_actions)
    assert jnp.allclose(out, ref_b, atol=2e-3), "mismatch vs bf16 reference"
    assert jnp.allclose(out, ref_f, atol=5e-2), "mismatch vs f32 reference"
    assert jnp.allclose(jnp.sum(out, axis=1), jnp.ones((batch,)), atol=2e-3)

    # --- amortized large-batch call (multi-tile grid, megacore-parallel) ---
    big = 256
    x_big = jax.random.normal(k_xl, (big, obs_size), jnp.float32)
    out_big = maddpg_actor_forward(x_big, packed,
                                   obs_size=obs_size, n_actions=n_actions)
    out_big = jax.block_until_ready(out_big)
    ref_big = reference_bf16(x_big, packed, obs_size, n_actions)
    assert out_big.shape == (big, n_actions)
    assert jnp.allclose(out_big, ref_big, atol=2e-3), "mismatch (large batch)"
    assert jnp.allclose(jnp.sum(out_big, axis=1), jnp.ones((big,)), atol=2e-3)

    print("KERNEL_OK")
</pallas_src>

<mosaic_0001>
module attributes {stable_mosaic.version = 11 : i64} {
  func.func @maddpg_actor_kernel(%arg0: i32, %arg1: memref<16x32xf32, #tpu.memory_space<vmem>>, %arg2: memref<32x384xbf16, #tpu.memory_space<vmem>>, %arg3: memref<384x128xbf16, #tpu.memory_space<vmem>>, %arg4: memref<128x128xbf16, #tpu.memory_space<vmem>>, %arg5: memref<16x128xf32, #tpu.memory_space<vmem>>) attributes {dimension_semantics = [#tpu.dimension_semantics<parallel>], iteration_bounds = array<i64: 1>, scalar_prefetch = 0 : i64, scratch_operands = 0 : i64, tpu.core_type = #tpu.core_type<tc>, window_params = [{transform_indices = @transform_0, window_bounds = array<i64: 16, 32>}, {pipeline_mode = #tpu.pipeline_mode<synchronous>, transform_indices = @transform_1, window_bounds = array<i64: 32, 384>}, {pipeline_mode = #tpu.pipeline_mode<synchronous>, transform_indices = @transform_2, window_bounds = array<i64: 384, 128>}, {pipeline_mode = #tpu.pipeline_mode<synchronous>, transform_indices = @transform_3, window_bounds = array<i64: 128, 128>}, {transform_indices = @transform_4, window_bounds = array<i64: 16, 128>}]} {
    %c0 = arith.constant 0 : index
    %c0_0 = arith.constant 0 : index
    %0 = vector.load %arg1[%c0, %c0_0] : memref<16x32xf32, #tpu.memory_space<vmem>>, vector<16x32xf32>
    %1 = arith.truncf %0 : vector<16x32xf32> to vector<16x32xbf16>
    %c0_1 = arith.constant 0 : index
    %c0_2 = arith.constant 0 : index
    %2 = vector.load %arg2[%c0_1, %c0_2] : memref<32x384xbf16, #tpu.memory_space<vmem>>, vector<32x384xbf16>
    %cst = arith.constant dense<0.000000e+00> : vector<16x384xf32>
    %3 = tpu.matmul %1, %2, %cst {dimension_numbers = #tpu.dot_dimension_numbers<[1], [0], [0], [1], [0, 0, 1, 1], [], []>} : vector<16x32xbf16>, vector<32x384xbf16>, vector<16x384xf32> -> vector<16x384xf32>
    %cst_3 = arith.constant 0.000000e+00 : f32
    %4 = vector.broadcast %cst_3 : f32 to vector<16x384xf32>
    %5 = arith.maximumf %3, %4 : vector<16x384xf32>
    %6 = arith.truncf %5 : vector<16x384xf32> to vector<16x384xbf16>
    %c0_4 = arith.constant 0 : index
    %c0_5 = arith.constant 0 : index
    %7 = vector.load %arg3[%c0_4, %c0_5] : memref<384x128xbf16, #tpu.memory_space<vmem>>, vector<384x128xbf16>
    %cst_6 = arith.constant dense<0.000000e+00> : vector<16x128xf32>
    %8 = tpu.matmul %6, %7, %cst_6 {dimension_numbers = #tpu.dot_dimension_numbers<[1], [0], [0], [1], [0, 0, 1, 1], [], []>} : vector<16x384xbf16>, vector<384x128xbf16>, vector<16x128xf32> -> vector<16x128xf32>
    %cst_7 = arith.constant 0.000000e+00 : f32
    %9 = vector.broadcast %cst_7 : f32 to vector<16x128xf32>
    %10 = arith.maximumf %8, %9 : vector<16x128xf32>
    %11 = arith.truncf %10 : vector<16x128xf32> to vector<16x128xbf16>
    %c0_8 = arith.constant 0 : index
    %c0_9 = arith.constant 0 : index
    %12 = vector.load %arg4[%c0_8, %c0_9] : memref<128x128xbf16, #tpu.memory_space<vmem>>, vector<128x128xbf16>
    %cst_10 = arith.constant dense<0.000000e+00> : vector<16x128xf32>
    %13 = tpu.matmul %11, %12, %cst_10 {dimension_numbers = #tpu.dot_dimension_numbers<[1], [0], [0], [1], [0, 0, 1, 1], [], []>} : vector<16x128xbf16>, vector<128x128xbf16>, vector<16x128xf32> -> vector<16x128xf32>
    %cst_11 = arith.constant dense<0xFF800000> : vector<16xf32>
    %14 = vector.multi_reduction <maximumf>, %13, %cst_11 [1] : vector<16x128xf32> to vector<16xf32>
    %15 = vector.shape_cast %14 : vector<16xf32> to vector<16x1xf32>
    %16 = vector.broadcast %15 : vector<16x1xf32> to vector<16x128xf32>
    %17 = arith.subf %13, %16 : vector<16x128xf32>
    %18 = math.exp %17 : vector<16x128xf32>
    %cst_12 = arith.constant dense<0.000000e+00> : vector<16xf32>
    %19 = vector.multi_reduction <add>, %18, %cst_12 [1] : vector<16x128xf32> to vector<16xf32>
    %20 = vector.shape_cast %19 : vector<16xf32> to vector<16x1xf32>
    %21 = tpu.reciprocal %20 : vector<16x1xf32> -> vector<16x1xf32>
    %22 = vector.broadcast %21 : vector<16x1xf32> to vector<16x128xf32>
    %23 = arith.mulf %18, %22 : vector<16x128xf32>
    %c0_13 = arith.constant 0 : index
    %c0_14 = arith.constant 0 : index
    %24 = vector.load %arg5[%c0_13, %c0_14] : memref<16x128xf32, #tpu.memory_space<vmem>>, vector<16x128xf32>
    tpu.vector_store %arg5[%c0_13, %c0_14], %23 {strides = array<i32>} : memref<16x128xf32, #tpu.memory_space<vmem>>, vector<16x128xf32>,
    return
  }
  func.func @transform_0(%arg0: i32) -> (i32, i32) {
    %c0_i32 = arith.constant 0 : i32
    %c0_i32_0 = arith.constant 0 : i32
    return %arg0, %c0_i32 : i32, i32
  }
  func.func @transform_1(%arg0: i32) -> (i32, i32) {
    %c0_i32 = arith.constant 0 : i32
    %c0_i32_0 = arith.constant 0 : i32
    %c0_i32_1 = arith.constant 0 : i32
    return %c0_i32, %c0_i32_0 : i32, i32
  }
  func.func @transform_2(%arg0: i32) -> (i32, i32) {
    %c0_i32 = arith.constant 0 : i32
    %c0_i32_0 = arith.constant 0 : i32
    %c0_i32_1 = arith.constant 0 : i32
    return %c0_i32, %c0_i32_0 : i32, i32
  }
  func.func @transform_3(%arg0: i32) -> (i32, i32) {
    %c0_i32 = arith.constant 0 : i32
    %c0_i32_0 = arith.constant 0 : i32
    %c0_i32_1 = arith.constant 0 : i32
    return %c0_i32, %c0_i32_0 : i32, i32
  }
  func.func @transform_4(%arg0: i32) -> (i32, i32) {
    %c0_i32 = arith.constant 0 : i32
    %c0_i32_0 = arith.constant 0 : i32
    return %arg0, %c0_i32 : i32, i32
  }
}

</mosaic_0001>

<bundles_post_ra>
// kernel: maddpg_actor_forward.1
= control target key start
LH: loop header
LB: loop body
LE: loop exit
PB: predicated region body
PF: predicated region fallthrough
CT: control target
= control target key end

     0   :  { %9 = vsyncpa [#allocation3], 0  ;;  %s950_s0 = inlined_call_operand.vmem [shape: f32[16,32], index: 0, kind: input, shape index: {}]   ;;  %s951_s1 = inlined_call_operand.hbm [shape: bf16[32,384], index: 1, kind: input, shape index: {}]   ;;  %s952_s2 = inlined_call_operand.hbm [shape: bf16[384,128], index: 2, kind: input, shape index: {}]   ;;  %s953_s3 = inlined_call_operand.vmem [shape: bf16[128,128], index: 3, kind: input, shape index: {}]   ;;  %s954_s4 = inlined_call_operand.vmem [shape: f32[16,128], index: 4, kind: output, shape index: {}]  }
   0x1   :  { %10 = vsyncpa [#allocation5], 0  ;;  %s830_s15 = smov [#allocation2]   ;;  %s782_s19 = scalar_lea.hbm %s951_s1, 768 }
   0x2   :  { %s18_s16 = sshll.u32 %s830_s15, 4  ;;  %p783_p0 = scmp.ne.s32.totalorder %s951_s1, %s782_s19  ;;  %s19_s16 = int_to_ptr.vmem [resolvable:$true] %s18_s16 }
   0x3   :  { %p786_p1 = scmp.lt.u32.totalorder %s782_s19, %s951_s1 }
   0x5   :  { %p788_p2 = pnand %p786_p1, %p783_p0 }
   0x7   :  { %791 = shalt.err (!%p788_p2)
}
   0x8   :  { %s792_s24 = scalar_lea.vmem %s19_s16, 768  ;;  %p797_p4 = scmp.lt.s32.totalorder %s19_s16, %s19_s16 }
   0x9   :  { %p793_p3 = scmp.ne.s32.totalorder %s19_s16, %s792_s24  ;;  %p798_p5 = scmp.lt.s32.totalorder %s792_s24, %s792_s24 }
   0xb   :  { %p799_p6 = por %p798_p5, %p797_p4 }
   0xd   :  { %p800_p7 = pnand %p799_p6, %p793_p3 }
   0xf   :  { %803 = shalt.err (!%p800_p7)
}
  0x10   :  { %s831_s25 = smov 192   ;;  %s832_s26 = smov 12  }
  0x11   :  { %24 = dma.hbm_to_vmem [thread:$0]  %s951_s1, 768, %s19_s16, [#allocation3], %s831_s25, %s831_s25, %s832_s26  }
  0x12   :  { %s833_s29 = smov [#allocation4]   ;;  %s804_s7 = scalar_lea.hbm %s952_s2, 3072 }
  0x13   :  { %s30_s30 = sshll.u32 %s833_s29, 4  ;;  %p805_p8 = scmp.ne.s32.totalorder %s952_s2, %s804_s7  ;;  %s31_s30 = int_to_ptr.vmem [resolvable:$true] %s30_s30 }
  0x14   :  { %p808_p9 = scmp.lt.u32.totalorder %s804_s7, %s952_s2 }
  0x16   :  { %p810_p10 = pnand %p808_p9, %p805_p8 }
  0x18   :  { %813 = shalt.err (!%p810_p10)
}
  0x19   :  { %s814_s12 = scalar_lea.vmem %s31_s30, 3072  ;;  %p819_p12 = scmp.lt.s32.totalorder %s31_s30, %s31_s30 }
  0x1a   :  { %p815_p11 = scmp.ne.s32.totalorder %s31_s30, %s814_s12  ;;  %p820_p13 = scmp.lt.s32.totalorder %s814_s12, %s814_s12 }
  0x1c   :  { %p821_p0 = por %p820_p13, %p819_p12 }
  0x1e   :  { %p822_p1 = pnand %p821_p0, %p815_p11 }
  0x20   :  { %825 = shalt.err (!%p822_p1)
}
  0x21   :  { %s834_s1 = smov 64   ;;  %s835_s13 = smov 4  }
  0x22   :  { %36 = dma.hbm_to_vmem [thread:$0]  %s952_s2, 3072, %s31_s30, [#allocation5], %s834_s1, %s834_s1, %s835_s13  }
  0x23   :  { %826 = dma.done.wait [#allocation3], 768  }
  0x24   :  { %827 = vsyncadd [#allocation3], 4294966528 }
  0x25   :  { %828 = dma.done.wait [#allocation5], 3072  }
  0x26   :  { %829 = vsyncadd [#allocation5], 4294964224  ;;  %v836_v0 = vmov 0   ;;  %v734_v1 = vld [vmem:[#allocation2 + $0x4] ss:$12 sps:$4 sm:$0xff]   ;;  %v47_v6 = vld [vmem:[%s950_s0 + $0x8] sm:$0xff] }
  0x27   :  { %125 = vmatprep.mubr.bf16.mxu1 %v836_v0  ;;  %v736_v2 = vld [vmem:[#allocation2] ss:$12 sps:$4 sm:$0xff]   ;;  %93 = vmatprep.subr.bf16.mxu1 %v734_v1  ;;  %v737_v3 = vld [vmem:[#allocation2 + $0x1c] ss:$12 sps:$4 sm:$0xff]   ;;  %v739_v4 = vld [vmem:[#allocation2 + $0x18] ss:$12 sps:$4 sm:$0xff]  }
  0x28   :  { %v46_v5 = vld [vmem:[%s950_s0] sm:$0xff]  ;;  %94 = vmatpush1.bf16.msra.mxu1 %v736_v2  ;;  %v740_v7 = vld [vmem:[#allocation2 + $0x8] ss:$12 sps:$4 sm:$0xff]   ;;  %vm89_vm0 = vcmask 261120   ;;  %v837_v11 = vmov 0.0   ;;  %v744_v12 = vld [vmem:[#allocation4 + $0x48] sm:$0xff]  }
  0x29   :  { %95 = vmatprep.subr.bf16.mxu1 %v737_v3  ;;  %v48_v8 = vpack.c.bf16 %v47_v6, %v46_v5  ;;  %v742_v9 = vld [vmem:[#allocation4 + $0x40] sm:$0xff]   ;;  %v745_v13 = vld [vmem:[#allocation4 + $0x8] sm:$0xff]   ;;  %v741_v14 = vld [vmem:[#allocation2 + $0x20] ss:$12 sps:$4 sm:$0xff]   ;;  %vm838_vm1 = vmmov 0  }
  0x2a   :  { %v743_v10 = vld [vmem:[#allocation4] sm:$0xff]   ;;  %637 = vmatprep.subr.bf16.mxu0 %v742_v9  ;;  %v747_v15 = vld [vmem:[#allocation4 + $0x50] sm:$0xff]   ;;  %v750_v17 = vld [vmem:[#allocation4 + $0x58] sm:$0xff]  }
  0x2b   :  { %638 = vmatpush3.bf16.msra.mxu0 %v743_v10  ;;  %v748_v16 = vld [vmem:[#allocation4 + $0x10] sm:$0xff]   ;;  %v746_v18 = vld [vmem:[#allocation4 + $0x80] sm:$0xff]   ;;  %v751_v19 = vld [vmem:[#allocation4 + $0x18] sm:$0xff]  }
  0x2c   :  { %96 = vmatpush1.bf16.msra.mxu1 %v739_v4  ;;  %639 = vmatprep.subr.bf16.mxu0 %v744_v12  ;;  %v753_v20 = vld [vmem:[#allocation4 + $0x60] sm:$0xff]   ;;  %v749_v21 = vld [vmem:[#allocation4 + $0x88] sm:$0xff]   ;;  %v752_v23 = vld [vmem:[#allocation4 + $0x90] sm:$0xff]  }
  0x2d   :  { %677 = vmatprep.subr.bf16.mxu1 %v837_v11  ;;  %v754_v22 = vld [vmem:[#allocation4 + $0x20] sm:$0xff]   ;;  %v756_v24 = vld [vmem:[#allocation4 + $0x68] sm:$0xff]   ;;  %v755_v26 = vld [vmem:[#allocation4 + $0x98] sm:$0xff]  }
  0x2e   :  { %v757_v25 = vld [vmem:[#allocation4 + $0x28] sm:$0xff]   ;;  %v758_v27 = vld [vmem:[#allocation4 + $0xa0] sm:$0xff]   ;;  %v759_v28 = vld [vmem:[#allocation4 + $0x70] sm:$0xff]  }
  0x2f   :  { %600 = vmatmul.mubr.msk.bf16.vlgmr.msra.gmra.mrb[0].mxu1 %vm89_vm0, %v48_v8  ;;  %640 = vmatpush3.bf16.msra.mxu0 %v745_v13  ;;  %v760_v29 = vld [vmem:[#allocation4 + $0x30] sm:$0xff]   ;;  %v761_v30 = vld [vmem:[#allocation4 + $0xa8] sm:$0xff]   ;;  %v762_v31 = vld [vmem:[#allocation4 + $0x78] sm:$0xff]  }
  0x30   :  { %678 = vmatpush3.bf16.msra.mxu1 %v740_v7  ;;  %681 = vmatprep.mubr.msk.bf16.mxu1 %vm838_vm1, %v837_v11  ;;  %v763_v32 = vld [vmem:[#allocation4 + $0x38] sm:$0xff]   ;;  %v764_v33 = vld [vmem:[#allocation4 + $0xb0] sm:$0xff]   ;;  %v768_v54 = vld [vmem:[%s953_s3 + $0x10] sm:$0xff]  }
  0x31   :  { %679 = vmatprep.subr.bf16.mxu1 %v837_v11  ;;  %641 = vmatprep.subr.bf16.mxu0 %v747_v15  ;;  %v765_v34 = vld [vmem:[#allocation4 + $0xb8] sm:$0xff]   ;;  %v766_v45 = vld [vmem:[%s953_s3] sm:$0xff]   ;;  %v769_v55 = vld [vmem:[%s953_s3 + $0x18] sm:$0xff]  }
  0x32   :  { %v767_v49 = vld [vmem:[%s953_s3 + $0x8] sm:$0xff]   ;;  %v770_v56 = vld [vmem:[%s953_s3 + $0x20] sm:$0xff]   ;;  %v772_v58 = vld [vmem:[%s953_s3 + $0x30] sm:$0xff]  }
  0x33   :  { %642 = vmatpush3.bf16.msra.mxu0 %v748_v16  ;;  %v771_v57 = vld [vmem:[%s953_s3 + $0x28] sm:$0xff]   ;;  %v773_v59 = vld [vmem:[%s953_s3 + $0x38] sm:$0xff]  }
  0x34   :  { %680 = vmatpush3.bf16.msra.mxu1 %v741_v14  ;;  %643 = vmatprep.subr.bf16.mxu0 %v750_v17 }
  0x35   :  { %685 = vmatprep.subr.bf16.mxu1 %v837_v11 }
  0x37   :  { %682 = vmatmul.mubr.msk.bf16.vlgmr.msra.gmra.mrb[4].mxu1 %vm89_vm0, %v48_v8  ;;  %644 = vmatpush3.bf16.msra.mxu0 %v751_v19 }
  0x38   :  { %686 = vmatpush3.bf16.msra.mxu1 %v746_v18  ;;  %701 = vmatprep.mubr.msk.bf16.mxu1 %vm838_vm1, %v837_v11 }
  0x39   :  { %687 = vmatprep.subr.bf16.mxu1 %v837_v11  ;;  %645 = vmatprep.subr.bf16.mxu0 %v753_v20 }
  0x3b   :  { %646 = vmatpush3.bf16.msra.mxu0 %v754_v22 }
  0x3c   :  { %688 = vmatpush3.bf16.msra.mxu1 %v749_v21  ;;  %647 = vmatprep.subr.bf16.mxu0 %v756_v24 }
  0x3d   :  { %689 = vmatprep.subr.bf16.mxu1 %v837_v11 }
  0x3f   :  { %648 = vmatpush3.bf16.msra.mxu0 %v757_v25 }
  0x40   :  { %690 = vmatpush3.bf16.msra.mxu1 %v752_v23  ;;  %649 = vmatprep.subr.bf16.mxu0 %v759_v28 }
  0x41   :  { %691 = vmatprep.subr.bf16.mxu1 %v837_v11 }
  0x43   :  { %650 = vmatpush3.bf16.msra.mxu0 %v760_v29 }
  0x44   :  { %692 = vmatpush3.bf16.msra.mxu1 %v755_v26  ;;  %651 = vmatprep.subr.bf16.mxu0 %v762_v31 }
  0x45   :  { %693 = vmatprep.subr.bf16.mxu1 %v837_v11 }
  0x47   :  { %652 = vmatpush3.bf16.msra.mxu0 %v763_v32 }
  0x48   :  { %694 = vmatpush3.bf16.msra.mxu1 %v758_v27  ;;  %705 = vmatprep.subr.bf16.mxu0 %v837_v11 }
  0x49   :  { %695 = vmatprep.subr.bf16.mxu1 %v837_v11 }
  0x4c   :  { %696 = vmatpush3.bf16.msra.mxu1 %v761_v30 }
  0x4d   :  { %697 = vmatprep.subr.bf16.mxu1 %v837_v11 }
  0x50   :  { %698 = vmatpush3.bf16.msra.mxu1 %v764_v33 }
  0x51   :  { %699 = vmatprep.subr.bf16.mxu1 %v837_v11 }
  0x54   :  { %700 = vmatpush3.bf16.msra.mxu1 %v765_v34 }
 0x102   :  { %v127_v35 = vpop.f32.mrb[0].mxu1 }
 0x103   :  { %v129_v36 = vpop.f32.mrb[1].mxu1  ;;  %v177_v38 = vmax.f32 %v127_v35, 0.0 }
 0x104   :  { %v131_v37 = vpop.f32.mrb[2].mxu1  ;;  %v178_v41 = vmax.f32 %v129_v36, 0.0 }
 0x105   :  { %v180_v39 = vmax.f32 %v131_v37, 0.0  ;;  %v133_v40 = vpop.f32.mrb[3].mxu1 }
 0x106   :  { %v181_v42 = vmax.f32 %v133_v40, 0.0 }
 0x107   :  { %v183_v43 = vpack.c.bf16 %v180_v39, %v177_v38 }
 0x108   :  { %v184_v44 = vpack.c.bf16 %v181_v42, %v178_v41 }
 0x10a   :  { %v170_v46 = vpop.f32.mrb[4].mxu1  ;;  %410 = vmatprep.mubr.bf16.mxu0 %v184_v44 }
 0x10b   :  { %v683_v47 = vpop.f32.mrb[5].mxu1  ;;  %411 = vmatmul.mubr.bf16.vlgmr.msra.gmra.mrb[0].mxu0 %v183_v43  ;;  %v179_v50 = vmax.f32 %v170_v46, 0.0 }
 0x10c   :  { %v173_v48 = vpop.f32.mrb[6].mxu1  ;;  %706 = vmatpush3.bf16.msra.mxu0 %v766_v45  ;;  %721 = vmatprep.mubr.msk.bf16.mxu0 %vm838_vm1, %v837_v11 }
 0x10d   :  { %v182_v51 = vmax.f32 %v173_v48, 0.0  ;;  %v684_v52 = vpop.f32.mrb[7].mxu1  ;;  %707 = vmatprep.subr.bf16.mxu0 %v837_v11 }
 0x10f   :  { %v185_v53 = vpack.c.bf16 %v182_v51, %v179_v50 }
 0x110   :  { %708 = vmatpush3.bf16.msra.mxu0 %v767_v49 }
 0x111   :  { %702 = vmatmul.mubr.bf16.vlgmr.msra.gmra.mrb[8].mxu1 %v185_v53  ;;  %709 = vmatprep.subr.bf16.mxu0 %v837_v11 }
 0x114   :  { %710 = vmatpush3.bf16.msra.mxu0 %v768_v54 }
 0x115   :  { %711 = vmatprep.subr.bf16.mxu0 %v837_v11 }
 0x118   :  { %712 = vmatpush3.bf16.msra.mxu0 %v769_v55 }
 0x119   :  { %713 = vmatprep.subr.bf16.mxu0 %v837_v11 }
 0x11c   :  { %714 = vmatpush3.bf16.msra.mxu0 %v770_v56 }
 0x11d   :  { %715 = vmatprep.subr.bf16.mxu0 %v837_v11 }
 0x120   :  { %716 = vmatpush3.bf16.msra.mxu0 %v771_v57 }
 0x121   :  { %717 = vmatprep.subr.bf16.mxu0 %v837_v11 }
 0x124   :  { %718 = vmatpush3.bf16.msra.mxu0 %v772_v58 }
 0x125   :  { %719 = vmatprep.subr.bf16.mxu0 %v837_v11 }
 0x128   :  { %720 = vmatpush3.bf16.msra.mxu0 %v773_v59 }
 0x1de   :  { %v653_v60 = vpop.f32.mrb[0].mxu0 }
 0x1df   :  { %v654_v61 = vpop.f32.mrb[1].mxu0 }
 0x1e0   :  { %v655_v62 = vadd.f32 %v654_v61, %v653_v60  ;;  %v656_v63 = vpop.f32.mrb[2].mxu0 }
 0x1e1   :  { %v657_v0 = vpop.f32.mrb[3].mxu0 }
 0x1e2   :  { %v658_v1 = vadd.f32 %v657_v0, %v656_v63 }
 0x1e4   :  { %v453_v2 = vpop.f32.mrb[8].mxu1 }
 0x1e5   :  { %v454_v3 = vadd.f32 %v655_v62, %v453_v2  ;;  %v703_v4 = vpop.f32.mrb[9].mxu1 }
 0x1e6   :  { %v456_v5 = vpop.f32.mrb[10].mxu1 }
 0x1e7   :  { %v457_v6 = vadd.f32 %v658_v1, %v456_v5  ;;  %v704_v7 = vpop.f32.mrb[11].mxu1  ;;  %v460_v8 = vmax.f32 %v454_v3, 0.0 }
 0x1e9   :  { %v461_v9 = vmax.f32 %v457_v6, 0.0 }
 0x1eb   :  { %v462_v10 = vpack.c.bf16 %v461_v9, %v460_v8 }
 0x1ed   :  { %722 = vmatmul.mubr.bf16.vlgmr.msra.gmra.mrb[4].mxu0 %v462_v10 }
 0x2c0   :  { %v561_v11 = vpop.f32.mrb[4].mxu0 }
 0x2c1   :  { %568 = vmax.xlane.f32.xlu0 %v561_v11  ;;  %v723_v12 = vpop.f32.mrb[5].mxu0 }
 0x2c2   :  { %v564_v13 = vpop.f32.mrb[6].mxu0 }
 0x2c3   :  { %v724_v14 = vpop.f32.mrb[7].mxu0 }
 0x2c5   :  { %570 = vmax.xlane.f32.xlu0 %v564_v13 }
 0x34e   :  { %v569_v15 = vpop.xlane.xlu0 %568 }
 0x34f   :  { %v572_v16 = vsub.f32 %v561_v11, %v569_v15 }
 0x351   :  { %v574_v17 = vmul.f32 1.442695, %v572_v16 }
 0x352   :  { %v571_v18 = vpop.xlane.xlu0 %570 }
 0x353   :  { %774 = vpow2.f32 %v574_v17  ;;  %v573_v19 = vsub.f32 %v564_v13, %v571_v18 }
 0x355   :  { %v576_v20 = vmul.f32 1.442695, %v573_v19 }
 0x357   :  { %776 = vpow2.f32 %v576_v20 }
 0x35d   :  { %v775_v21 = vpop.eup %774 }
 0x35e   :  { %578 = vadd.xlane.f32.xlu1 %v775_v21 }
 0x361   :  { %v777_v22 = vpop.eup %776 }
 0x362   :  { %580 = vadd.xlane.f32.xlu1 %v777_v22 }
 0x3eb   :  { %v579_v23 = vpop.xlane.xlu1 %578 }
 0x3ec   :  { %778 = vrcp.f32 %v579_v23 }
 0x3ef   :  { %v581_v24 = vpop.xlane.xlu1 %580 }
 0x3f0   :  { %780 = vrcp.f32 %v581_v24 }
 0x3f6   :  { %v779_v25 = vpop.eup %778 }
 0x3f7   :  { %v584_v26 = vmul.f32 %v779_v25, %v775_v21 }
 0x3f9   :  { %586 = vst [vmem:[%s954_s4] sm:$0xff] %v584_v26 }
 0x3fa   :  { %v781_v27 = vpop.eup %780 }
 0x3fb   :  { %v585_v28 = vmul.f32 %v781_v27, %v777_v22 }
 0x3fd   :  { %587 = vst [vmem:[%s954_s4 + $0x8] sm:$0xff] %v585_v28 }
 0x3fe   :  { %592 = vsyncpa [#allocation3], 1 }
 0x3ff   :  { %593 = vsyncpa [#allocation5], 1 }

</bundles_post_ra>
